<compile_context>
chip_gen: v6e
topology: v6e:2x2x1
jax: 0.10.0
libtpu: 0.0.40
codegen_flags: <defaults>
</compile_context>

<pallas_src>
import functools

import jax
import jax.numpy as jnp
from jax.experimental import pallas as pl
from jax.experimental.pallas import tpu as pltpu


LN_EPS = 1e-5


def _round_up(x, m):
    return ((x + m - 1) // m) * m


def _pad2d(a, rows, cols):
    return jnp.pad(a, ((0, rows - a.shape[0]), (0, cols - a.shape[1])))


def seq_encoder_kernel(x_ref, wp_ref, bp_ref, wc_ref, bc_ref, out_ref, acc_ref,
                       *, inv_latent):
    """One (batch_tile, k_tile) grid step.

    x_ref:  (TB, TK)       input slab (f32 or bf16)
    wp_ref: (TK, LAT_P)    proj-weight K-slab (f32 or bf16), padded cols are 0
    bp_ref: (1, LAT_P)     proj bias (f32), padded lanes 0
    wc_ref: (LAT_P, NC_P)  LN-folded classifier weight (f32), padded rows/cols 0
    bc_ref: (1, NC_P)      LN-folded classifier bias (f32), padded lanes 0
    out_ref:(TB, NC_P)     logits (f32), padded lanes 0
    acc_ref:(TB, LAT_P)    f32 accumulator scratch, resident across k steps
    """
    k = pl.program_id(1)

    @pl.when(k == 0)
    def _():
        acc_ref[...] = jnp.zeros_like(acc_ref)

    # ---- proj: accumulate x-slab @ wp-slab on the MXU (f32 accumulation) ----
    acc_ref[...] += jnp.dot(x_ref[...], wp_ref[...],
                            preferred_element_type=jnp.float32)

    @pl.when(k == pl.num_programs(1) - 1)
    def _():
        # ---- bias + ReLU ----
        h = acc_ref[...] + bp_ref[...]
        h = jnp.maximum(h, 0.0)
        # Padded latent lanes of h are exactly 0 (zero wp cols, zero bias), so
        # one-pass sums over the padded width divided by the *true* latent
        # count give the correct LayerNorm statistics.
        s1 = jnp.sum(h, axis=-1, keepdims=True)
        s2 = jnp.sum(h * h, axis=-1, keepdims=True)
        mean = s1 * inv_latent
        var = s2 * inv_latent - mean * mean
        hn = (h - mean) * jax.lax.rsqrt(var + LN_EPS)
        # ---- classifier (LN gamma/beta already folded into wc/bc) ----
        logits = jnp.dot(hn, wc_ref[...], preferred_element_type=jnp.float32)
        logits = logits + bc_ref[...]
        out_ref[...] = logits.astype(out_ref.dtype)


def sequence_encoder_forward(x, params, *, matmul_dtype=jnp.float32,
                             tb=128, tk=512):
    """x: (B, L, D) float32. Returns logits (B, n_classes) float32.

    matmul_dtype: dtype for the big first matmul's operands (f32 or bf16).
    """
    B, L, D = x.shape
    wp, bp, gamma, beta, wc, bc = params
    flat_dim = wp.shape[0]
    latent_dim = wp.shape[1]
    n_classes = wc.shape[1]
    assert flat_dim == L * D

    # ---- padded / tiled geometry ----
    lat_p = _round_up(latent_dim, 128)       # lane- & MXU-dense latent
    nc_p = _round_up(n_classes, 128)         # lane-dense output (unmasked vst)
    TK = tk if flat_dim > tk else _round_up(flat_dim, 128)
    f_p = _round_up(flat_dim, TK)
    TB = min(tb, _round_up(B, 8))
    b_p = _round_up(B, TB)
    nb, nk = b_p // TB, f_p // TK

    # ---- activations: flatten, zero-pad, cast matmul operands ----
    x2 = x.reshape(B, flat_dim)
    x2 = _pad2d(x2, b_p, f_p).astype(matmul_dtype)

    # ---- params: zero-pad; fold LayerNorm affine into the classifier ----
    wp_p = _pad2d(wp, f_p, lat_p).astype(matmul_dtype)
    bp_p = _pad2d(bp, 1, lat_p)
    wc_fold = gamma.reshape(-1, 1) * wc          # (latent, n_classes)
    bc_fold = beta @ wc + bc                     # (1, n_classes)
    wc_p = _pad2d(wc_fold, lat_p, nc_p)
    bc_p = _pad2d(bc_fold, 1, nc_p)

    kernel = functools.partial(seq_encoder_kernel,
                               inv_latent=1.0 / float(latent_dim))

    out_p = pl.pallas_call(
        kernel,
        out_shape=jax.ShapeDtypeStruct((b_p, nc_p), jnp.float32),
        grid=(nb, nk),                       # batch parallel, K reduction last
        in_specs=[
            pl.BlockSpec((TB, TK), lambda i, k: (i, k)),        # x slab
            pl.BlockSpec((TK, lat_p), lambda i, k: (k, 0)),     # wp K-slab
            pl.BlockSpec((1, lat_p), lambda i, k: (0, 0)),      # proj bias
            pl.BlockSpec((lat_p, nc_p), lambda i, k: (0, 0)),   # folded clf W
            pl.BlockSpec((1, nc_p), lambda i, k: (0, 0)),       # folded clf b
        ],
        out_specs=pl.BlockSpec((TB, nc_p), lambda i, k: (i, 0)),
        scratch_shapes=[pltpu.VMEM((TB, lat_p), jnp.float32)],  # f32 accumulator
        compiler_params=pltpu.CompilerParams(
            dimension_semantics=("parallel", "arbitrary")),
    )(x2, wp_p, bp_p, wc_p, bc_p)

    return out_p[:B, :n_classes]


def init_params(key, flat_dim, latent_dim, n_classes):
    """Deterministic init mimicking PyTorch nn.Linear defaults
    (uniform(-1/sqrt(fan_in), 1/sqrt(fan_in))) and LayerNorm (ones/zeros)."""
    k1, k2, k3, k4 = jax.random.split(key, 4)
    lim_p = 1.0 / jnp.sqrt(flat_dim)
    lim_c = 1.0 / jnp.sqrt(latent_dim)
    wp = jax.random.uniform(k1, (flat_dim, latent_dim), jnp.float32, -lim_p, lim_p)
    bp = jax.random.uniform(k2, (1, latent_dim), jnp.float32, -lim_p, lim_p)
    gamma = jnp.ones((1, latent_dim), jnp.float32)
    beta = jnp.zeros((1, latent_dim), jnp.float32)
    wc = jax.random.uniform(k3, (latent_dim, n_classes), jnp.float32, -lim_c, lim_c)
    bc = jax.random.uniform(k4, (1, n_classes), jnp.float32, -lim_c, lim_c)
    return (wp, bp, gamma, beta, wc, bc)


def reference_forward(x, params):
    """Pure-JAX reference (eval-mode dropout = identity), unfolded params."""
    wp, bp, gamma, beta, wc, bc = params
    B, L, D = x.shape
    h = x.reshape(B, L * D) @ wp + bp
    h = jnp.maximum(h, 0.0)
    mean = jnp.mean(h, axis=-1, keepdims=True)
    var = jnp.mean((h - mean) ** 2, axis=-1, keepdims=True)
    hn = (h - mean) / jnp.sqrt(var + LN_EPS) * gamma + beta
    return hn @ wc + bc


if __name__ == "__main__":
    # Small shapes consistent with the forward pass:
    #   batch=2, sequence_length=8, per-step features=16 -> flat_dim=128
    #   latent_dim=32, n_classes=5
    B, L, D = 2, 8, 16
    latent_dim, n_classes = 32, 5
    flat_dim = L * D

    key = jax.random.PRNGKey(0)
    kx, kp = jax.random.split(key)
    x = jax.random.normal(kx, (B, L, D), dtype=jnp.float32)
    params = init_params(kp, flat_dim, latent_dim, n_classes)

    ref = reference_forward(x, params)

    # f32 operand path (bit-accurate vs reference).
    out = sequence_encoder_forward(x, params)
    out = jax.block_until_ready(out)
    assert out.shape == (B, n_classes), out.shape
    assert jnp.allclose(out, ref, atol=2e-4, rtol=2e-4), \
        f"f32 max err {jnp.max(jnp.abs(out - ref))}"

    # bf16 operand path for the bandwidth-bound first matmul (f32 accumulation).
    out_bf16 = sequence_encoder_forward(x, params, matmul_dtype=jnp.bfloat16)
    out_bf16 = jax.block_until_ready(out_bf16)
    assert out_bf16.shape == (B, n_classes), out_bf16.shape
    assert jnp.allclose(out_bf16, ref, atol=1e-1, rtol=1e-1), \
        f"bf16 max err {jnp.max(jnp.abs(out_bf16 - ref))}"

    print("KERNEL_OK")
</pallas_src>

<mosaic_0001>
module attributes {stable_mosaic.version = 11 : i64} {
  func.func @seq_encoder_kernel(%arg0: i32, %arg1: i32, %arg2: memref<8x128xf32, #tpu.memory_space<vmem>>, %arg3: memref<128x128xf32, #tpu.memory_space<vmem>>, %arg4: memref<1x128xf32, #tpu.memory_space<vmem>>, %arg5: memref<128x128xf32, #tpu.memory_space<vmem>>, %arg6: memref<1x128xf32, #tpu.memory_space<vmem>>, %arg7: memref<8x128xf32, #tpu.memory_space<vmem>>, %arg8: memref<8x128xf32, #tpu.memory_space<vmem>>) attributes {dimension_semantics = [#tpu.dimension_semantics<parallel>, #tpu.dimension_semantics<arbitrary>], iteration_bounds = array<i64: 1, 1>, scalar_prefetch = 0 : i64, scratch_operands = 1 : i64, tpu.core_type = #tpu.core_type<tc>, window_params = [{transform_indices = @transform_0, window_bounds = array<i64: 8, 128>}, {transform_indices = @transform_1, window_bounds = array<i64: 128, 128>}, {pipeline_mode = #tpu.pipeline_mode<synchronous>, transform_indices = @transform_2, window_bounds = array<i64: 1, 128>}, {pipeline_mode = #tpu.pipeline_mode<synchronous>, transform_indices = @transform_3, window_bounds = array<i64: 128, 128>}, {pipeline_mode = #tpu.pipeline_mode<synchronous>, transform_indices = @transform_4, window_bounds = array<i64: 1, 128>}, {transform_indices = @transform_5, window_bounds = array<i64: 8, 128>}]} {
    %c0_i32 = arith.constant 0 : i32
    %0 = arith.cmpi eq, %arg1, %c0_i32 : i32
    %1 = arith.extui %0 : i1 to i32
    %c0_i32_0 = arith.constant 0 : i32
    %2 = arith.cmpi ne, %1, %c0_i32_0 : i32
    scf.if %2 {
      %cst_10 = arith.constant 0.000000e+00 : f32
      %12 = vector.broadcast %cst_10 : f32 to vector<8x128xf32>
      %c0_11 = arith.constant 0 : index
      %c0_12 = arith.constant 0 : index
      %13 = vector.load %arg8[%c0_11, %c0_12] : memref<8x128xf32, #tpu.memory_space<vmem>>, vector<8x128xf32>
      tpu.vector_store %arg8[%c0_11, %c0_12], %12 {strides = array<i32>} : memref<8x128xf32, #tpu.memory_space<vmem>>, vector<8x128xf32>,
    } else {
    }
    %c0 = arith.constant 0 : index
    %c0_1 = arith.constant 0 : index
    %3 = vector.load %arg8[%c0, %c0_1] : memref<8x128xf32, #tpu.memory_space<vmem>>, vector<8x128xf32>
    %c0_2 = arith.constant 0 : index
    %c0_3 = arith.constant 0 : index
    %4 = vector.load %arg2[%c0_2, %c0_3] : memref<8x128xf32, #tpu.memory_space<vmem>>, vector<8x128xf32>
    %c0_4 = arith.constant 0 : index
    %c0_5 = arith.constant 0 : index
    %5 = vector.load %arg3[%c0_4, %c0_5] : memref<128x128xf32, #tpu.memory_space<vmem>>, vector<128x128xf32>
    %cst = arith.constant dense<0.000000e+00> : vector<8x128xf32>
    %6 = tpu.matmul %4, %5, %cst {dimension_numbers = #tpu.dot_dimension_numbers<[1], [0], [0], [1], [0, 0, 1, 1], [], []>} : vector<8x128xf32>, vector<128x128xf32>, vector<8x128xf32> -> vector<8x128xf32>
    %7 = arith.addf %3, %6 : vector<8x128xf32>
    %c0_6 = arith.constant 0 : index
    %c0_7 = arith.constant 0 : index
    %8 = vector.load %arg8[%c0_6, %c0_7] : memref<8x128xf32, #tpu.memory_space<vmem>>, vector<8x128xf32>
    tpu.vector_store %arg8[%c0_6, %c0_7], %7 {strides = array<i32>} : memref<8x128xf32, #tpu.memory_space<vmem>>, vector<8x128xf32>,
    %c0_i32_8 = arith.constant 0 : i32
    %9 = arith.cmpi eq, %arg1, %c0_i32_8 : i32
    %10 = arith.extui %9 : i1 to i32
    %c0_i32_9 = arith.constant 0 : i32
    %11 = arith.cmpi ne, %10, %c0_i32_9 : i32
    scf.if %11 {
      %c0_10 = arith.constant 0 : index
      %c0_11 = arith.constant 0 : index
      %12 = vector.load %arg8[%c0_10, %c0_11] : memref<8x128xf32, #tpu.memory_space<vmem>>, vector<8x128xf32>
      %c0_12 = arith.constant 0 : index
      %c0_13 = arith.constant 0 : index
      %13 = vector.load %arg4[%c0_12, %c0_13] : memref<1x128xf32, #tpu.memory_space<vmem>>, vector<1x128xf32>
      %14 = vector.broadcast %13 : vector<1x128xf32> to vector<8x128xf32>
      %15 = arith.addf %12, %14 : vector<8x128xf32>
      %cst_14 = arith.constant 0.000000e+00 : f32
      %16 = vector.broadcast %cst_14 : f32 to vector<8x128xf32>
      %17 = arith.maximumf %15, %16 : vector<8x128xf32>
      %cst_15 = arith.constant dense<0.000000e+00> : vector<8xf32>
      %18 = vector.multi_reduction <add>, %17, %cst_15 [1] : vector<8x128xf32> to vector<8xf32>
      %19 = vector.shape_cast %18 : vector<8xf32> to vector<8x1xf32>
      %20 = arith.mulf %17, %17 : vector<8x128xf32>
      %cst_16 = arith.constant dense<0.000000e+00> : vector<8xf32>
      %21 = vector.multi_reduction <add>, %20, %cst_16 [1] : vector<8x128xf32> to vector<8xf32>
      %22 = vector.shape_cast %21 : vector<8xf32> to vector<8x1xf32>
      %cst_17 = arith.constant 3.125000e-02 : f32
      %23 = vector.broadcast %cst_17 : f32 to vector<8x1xf32>
      %24 = arith.mulf %19, %23 : vector<8x1xf32>
      %cst_18 = arith.constant 3.125000e-02 : f32
      %25 = vector.broadcast %cst_18 : f32 to vector<8x1xf32>
      %26 = arith.mulf %22, %25 : vector<8x1xf32>
      %27 = arith.mulf %24, %24 : vector<8x1xf32>
      %28 = arith.subf %26, %27 : vector<8x1xf32>
      %29 = vector.broadcast %24 : vector<8x1xf32> to vector<8x128xf32>
      %30 = arith.subf %17, %29 : vector<8x128xf32>
      %cst_19 = arith.constant 9.99999974E-6 : f32
      %31 = vector.broadcast %cst_19 : f32 to vector<8x1xf32>
      %32 = arith.addf %28, %31 : vector<8x1xf32>
      %33 = math.rsqrt %32 : vector<8x1xf32>
      %34 = vector.broadcast %33 : vector<8x1xf32> to vector<8x128xf32>
      %35 = arith.mulf %30, %34 : vector<8x128xf32>
      %c0_20 = arith.constant 0 : index
      %c0_21 = arith.constant 0 : index
      %36 = vector.load %arg5[%c0_20, %c0_21] : memref<128x128xf32, #tpu.memory_space<vmem>>, vector<128x128xf32>
      %cst_22 = arith.constant dense<0.000000e+00> : vector<8x128xf32>
      %37 = tpu.matmul %35, %36, %cst_22 {dimension_numbers = #tpu.dot_dimension_numbers<[1], [0], [0], [1], [0, 0, 1, 1], [], []>} : vector<8x128xf32>, vector<128x128xf32>, vector<8x128xf32> -> vector<8x128xf32>
      %c0_23 = arith.constant 0 : index
      %c0_24 = arith.constant 0 : index
      %38 = vector.load %arg6[%c0_23, %c0_24] : memref<1x128xf32, #tpu.memory_space<vmem>>, vector<1x128xf32>
      %39 = vector.broadcast %38 : vector<1x128xf32> to vector<8x128xf32>
      %40 = arith.addf %37, %39 : vector<8x128xf32>
      %c0_25 = arith.constant 0 : index
      %c0_26 = arith.constant 0 : index
      %41 = vector.load %arg7[%c0_25, %c0_26] : memref<8x128xf32, #tpu.memory_space<vmem>>, vector<8x128xf32>
      tpu.vector_store %arg7[%c0_25, %c0_26], %40 {strides = array<i32>} : memref<8x128xf32, #tpu.memory_space<vmem>>, vector<8x128xf32>,
    } else {
    }
    return
  }
  func.func @transform_0(%arg0: i32, %arg1: i32) -> (i32, i32) {
    %c0_i32 = arith.constant 0 : i32
    return %arg0, %arg1 : i32, i32
  }
  func.func @transform_1(%arg0: i32, %arg1: i32) -> (i32, i32) {
    %c0_i32 = arith.constant 0 : i32
    %c0_i32_0 = arith.constant 0 : i32
    return %arg1, %c0_i32 : i32, i32
  }
  func.func @transform_2(%arg0: i32, %arg1: i32) -> (i32, i32) {
    %c0_i32 = arith.constant 0 : i32
    %c0_i32_0 = arith.constant 0 : i32
    %c0_i32_1 = arith.constant 0 : i32
    return %c0_i32, %c0_i32_0 : i32, i32
  }
  func.func @transform_3(%arg0: i32, %arg1: i32) -> (i32, i32) {
    %c0_i32 = arith.constant 0 : i32
    %c0_i32_0 = arith.constant 0 : i32
    %c0_i32_1 = arith.constant 0 : i32
    return %c0_i32, %c0_i32_0 : i32, i32
  }
  func.func @transform_4(%arg0: i32, %arg1: i32) -> (i32, i32) {
    %c0_i32 = arith.constant 0 : i32
    %c0_i32_0 = arith.constant 0 : i32
    %c0_i32_1 = arith.constant 0 : i32
    return %c0_i32, %c0_i32_0 : i32, i32
  }
  func.func @transform_5(%arg0: i32, %arg1: i32) -> (i32, i32) {
    %c0_i32 = arith.constant 0 : i32
    %c0_i32_0 = arith.constant 0 : i32
    return %arg0, %c0_i32 : i32, i32
  }
}

</mosaic_0001>

<bundles_post_ra>
// kernel: tpu_custom_call.1
= control target key start
LH: loop header
LB: loop body
LE: loop exit
PB: predicated region body
PF: predicated region fallthrough
CT: control target
= control target key end

     0   :  { %10 = vsyncpa [#allocation4], 0  ;;  %s583_s0 = inlined_call_operand.hbm [shape: f32[8,128], index: 0, kind: input, shape index: {}]   ;;  %s584_s1 = inlined_call_operand.hbm [shape: f32[128,128], index: 1, kind: input, shape index: {}]   ;;  %s585_s2 = inlined_call_operand.vmem [shape: f32[1,128], index: 2, kind: input, shape index: {}]   ;;  %s586_s3 = inlined_call_operand.hbm [shape: f32[128,128], index: 3, kind: input, shape index: {}]   ;;  %s587_s4 = inlined_call_operand.vmem [shape: f32[1,128], index: 4, kind: input, shape index: {}]   ;;  %s588_s5 = inlined_call_operand.hbm [shape: f32[8,128], index: 5, kind: output, shape index: {}]  }
   0x1   :  { %11 = vsyncpa [#allocation7], 0 }
   0x2   :  { %12 = vsyncpa [#allocation5], 0  ;;  %s493_s18 = smov [#allocation6]  }
   0x3   :  { %s28_s19 = sshll.u32 %s493_s18, 4  ;;  %s29_s19 = int_to_ptr.vmem [resolvable:$true] %s28_s19 }
   0x4   :  { %s415_s20 = scalar_lea.vmem %s29_s19, 2048  ;;  %p420_p1 = scmp.lt.s32.totalorder %s29_s19, %s29_s19 }
   0x5   :  { %p416_p0 = scmp.ne.s32.totalorder %s29_s19, %s415_s20  ;;  %p421_p2 = scmp.lt.s32.totalorder %s415_s20, %s415_s20 }
   0x7   :  { %p422_p3 = por %p421_p2, %p420_p1 }
   0x9   :  { %p423_p4 = pnand %p422_p3, %p416_p0 }
   0xb   :  { %426 = shalt.err (!%p423_p4)
}
   0xc   :  { %s494_s21 = smov 128   ;;  %s495_s22 = smov 8  }
   0xd   :  { %34 = dma.hbm_to_vmem [thread:$0]  %s584_s1, 2048, %s29_s19, [#allocation7], %s494_s21, %s494_s21, %s495_s22  }
   0xe   :  { %s496_s25 = smov [#allocation3]   ;;  %s497_s27 = smov [#allocation8]  }
   0xf   :  { %s19_s26 = sshll.u32 %s496_s25, 4  ;;  %s42_s28 = sshll.u32 %s497_s27, 4  ;;  %s20_s26 = int_to_ptr.vmem [resolvable:$true] %s19_s26  ;;  %s43_s28 = int_to_ptr.vmem [resolvable:$true] %s42_s28 }
  0x10   :  { %s435_s29 = scalar_lea.vmem %s20_s26, 128  ;;  %p440_p6 = scmp.lt.s32.totalorder %s20_s26, %s20_s26 }
  0x11   :  { %p436_p5 = scmp.ne.s32.totalorder %s20_s26, %s435_s29  ;;  %p441_p7 = scmp.lt.s32.totalorder %s435_s29, %s435_s29 }
  0x13   :  { %p442_p8 = por %p441_p7, %p440_p6 }
  0x15   :  { %p443_p9 = pnand %p442_p8, %p436_p5 }
  0x17   :  { %446 = shalt.err (!%p443_p9)
}
  0x18   :  { %22 = dma.hbm_to_vmem [thread:$0]  %s583_s0, 128, %s20_s26, [#allocation4]  }
  0x19   :  { %s455_s7 = scalar_lea.vmem %s43_s28, 2048  ;;  %p460_p11 = scmp.lt.s32.totalorder %s43_s28, %s43_s28 }
  0x1a   :  { %p456_p10 = scmp.ne.s32.totalorder %s43_s28, %s455_s7  ;;  %p461_p12 = scmp.lt.s32.totalorder %s455_s7, %s455_s7 }
  0x1c   :  { %p462_p13 = por %p461_p12, %p460_p11 }
  0x1e   :  { %p463_p0 = pnand %p462_p13, %p456_p10 }
  0x20   :  { %466 = shalt.err (!%p463_p0)
}
  0x21   :  { %48 = dma.hbm_to_vmem [thread:$0]  %s586_s3, 2048, %s43_s28, [#allocation7], %s494_s21, %s494_s21, %s495_s22  }
  0x22   :  { %487 = dma.done.wait [#allocation4], 128  }
  0x23   :  { %488 = vsyncadd [#allocation4], 4294967168 }
  0x24   :  { %489 = dma.done.wait [#allocation7], 4096  }
  0x25   :  { %490 = vsyncadd [#allocation7], 4294963200  ;;  %v498_v0 = vmov 0.0   ;;  %vm499_vm0 = vmmov 0   ;;  %v82_v1 = vld [vmem:[#allocation6 + $0x78] sm:$0xff]  ;;  %v81_v2 = vld [vmem:[#allocation6 + $0x70] sm:$0xff] }
  0x26   :  { %327 = vmatprep.subr.mxu0 %v498_v0  ;;  %359 = vmatprep.mubr.msk.f32.mxu0 %vm499_vm0, %v498_v0  ;;  %v80_v3 = vld [vmem:[#allocation6 + $0x68] sm:$0xff]  ;;  %v79_v4 = vld [vmem:[#allocation6 + $0x60] sm:$0xff]  ;;  %v78_v5 = vld [vmem:[#allocation6 + $0x58] sm:$0xff]  ;;  %s500_s10 = smov [#allocation9]  }
  0x27   :  { %362 = vmatprep.subr.mxu1 %v498_v0  ;;  %394 = vmatprep.mubr.msk.f32.mxu1 %vm499_vm0, %v498_v0  ;;  %v77_v6 = vld [vmem:[#allocation6 + $0x50] sm:$0xff]  ;;  %v76_v7 = vld [vmem:[#allocation6 + $0x48] sm:$0xff]  ;;  %v75_v8 = vld [vmem:[#allocation6 + $0x40] sm:$0xff]  ;;  %s281_s11 = sshll.u32 %s500_s10, 4  ;;  %s282_s11 = int_to_ptr.vmem [resolvable:$true] %s281_s11 }
  0x28   :  { %328 = vmatpush3.msra.mxu0 %v82_v1  ;;  %v74_v9 = vld [vmem:[#allocation6 + $0x38] sm:$0xff]  ;;  %v73_v10 = vld [vmem:[#allocation6 + $0x30] sm:$0xff]  ;;  %v72_v11 = vld [vmem:[#allocation6 + $0x28] sm:$0xff]  ;;  %s467_s12 = scalar_lea.vmem %s282_s11, 128  ;;  %p472_p2 = scmp.lt.s32.totalorder %s282_s11, %s282_s11 }
  0x29   :  { %329 = vmatprep.subr.mxu0 %v498_v0  ;;  %v71_v12 = vld [vmem:[#allocation6 + $0x20] sm:$0xff]  ;;  %v70_v13 = vld [vmem:[#allocation6 + $0x18] sm:$0xff]  ;;  %v69_v14 = vld [vmem:[#allocation6 + $0x10] sm:$0xff]  ;;  %p468_p1 = scmp.ne.s32.totalorder %s282_s11, %s467_s12  ;;  %p473_p3 = scmp.lt.s32.totalorder %s467_s12, %s467_s12 }
  0x2a   :  { %330 = vmatpush3.msra.mxu0 %v81_v2  ;;  %v68_v15 = vld [vmem:[#allocation6 + $0x8] sm:$0xff]  ;;  %v67_v16 = vld [vmem:[#allocation6] sm:$0xff]  ;;  %v66_v17 = vld [vmem:[#allocation3] sm:$0xff] }
  0x2b   :  { %331 = vmatprep.subr.mxu0 %v498_v0  ;;  %v196_v18 = vld [vmem:[#allocation8 + $0x78] sm:$0xff]  ;;  %v195_v19 = vld [vmem:[#allocation8 + $0x70] sm:$0xff]  ;;  %v194_v20 = vld [vmem:[#allocation8 + $0x68] sm:$0xff]  ;;  %p474_p4 = por %p473_p3, %p472_p2 }
  0x2c   :  { %332 = vmatpush3.msra.mxu0 %v80_v3  ;;  %363 = vmatpush3.msra.mxu1 %v196_v18  ;;  %v291_v21 = vld [vmem:[%s585_s2] ss:$0 sm:$0xff]  ;;  %v193_v27 = vld [vmem:[#allocation8 + $0x60] sm:$0xff]  ;;  %v191_v29 = vld [vmem:[#allocation8 + $0x50] sm:$0xff] }
  0x2d   :  { %333 = vmatprep.subr.mxu0 %v498_v0  ;;  %364 = vmatprep.subr.mxu1 %v498_v0  ;;  %v192_v28 = vld [vmem:[#allocation8 + $0x58] sm:$0xff]  ;;  %v190_v30 = vld [vmem:[#allocation8 + $0x48] sm:$0xff]  ;;  %v189_v31 = vld [vmem:[#allocation8 + $0x40] sm:$0xff]  ;;  %p475_p5 = pnand %p474_p4, %p468_p1 }
  0x2e   :  { %334 = vmatpush3.msra.mxu0 %v79_v4  ;;  %365 = vmatpush3.msra.mxu1 %v195_v19  ;;  %v188_v32 = vld [vmem:[#allocation8 + $0x38] sm:$0xff]  ;;  %v187_v33 = vld [vmem:[#allocation8 + $0x30] sm:$0xff]  ;;  %v186_v34 = vld [vmem:[#allocation8 + $0x28] sm:$0xff] }
  0x2f   :  { %335 = vmatprep.subr.mxu0 %v498_v0  ;;  %366 = vmatprep.subr.mxu1 %v498_v0  ;;  %v185_v35 = vld [vmem:[#allocation8 + $0x20] sm:$0xff]  ;;  %v184_v36 = vld [vmem:[#allocation8 + $0x18] sm:$0xff]  ;;  %v183_v37 = vld [vmem:[#allocation8 + $0x10] sm:$0xff] }
  0x30   :  { %336 = vmatpush3.msra.mxu0 %v78_v5  ;;  %367 = vmatpush3.msra.mxu1 %v194_v20  ;;  %v182_v38 = vld [vmem:[#allocation8 + $0x8] sm:$0xff]  ;;  %v181_v39 = vld [vmem:[#allocation8] sm:$0xff]  ;;  %v292_v50 = vld [vmem:[%s587_s4] ss:$0 sm:$0xff] }
  0x31   :  { %337 = vmatprep.subr.mxu0 %v498_v0  ;;  %368 = vmatprep.subr.mxu1 %v498_v0 }
  0x32   :  { %338 = vmatpush3.msra.mxu0 %v77_v6  ;;  %369 = vmatpush3.msra.mxu1 %v193_v27 }
  0x33   :  { %339 = vmatprep.subr.mxu0 %v498_v0  ;;  %370 = vmatprep.subr.mxu1 %v498_v0 }
  0x34   :  { %340 = vmatpush3.msra.mxu0 %v76_v7  ;;  %371 = vmatpush3.msra.mxu1 %v192_v28 }
  0x35   :  { %341 = vmatprep.subr.mxu0 %v498_v0  ;;  %372 = vmatprep.subr.mxu1 %v498_v0 }
  0x36   :  { %342 = vmatpush3.msra.mxu0 %v75_v8  ;;  %373 = vmatpush3.msra.mxu1 %v191_v29 }
  0x37   :  { %343 = vmatprep.subr.mxu0 %v498_v0  ;;  %374 = vmatprep.subr.mxu1 %v498_v0 }
  0x38   :  { %344 = vmatpush3.msra.mxu0 %v74_v9  ;;  %375 = vmatpush3.msra.mxu1 %v190_v30 }
  0x39   :  { %345 = vmatprep.subr.mxu0 %v498_v0  ;;  %376 = vmatprep.subr.mxu1 %v498_v0 }
  0x3a   :  { %346 = vmatpush3.msra.mxu0 %v73_v10  ;;  %377 = vmatpush3.msra.mxu1 %v189_v31 }
  0x3b   :  { %347 = vmatprep.subr.mxu0 %v498_v0  ;;  %378 = vmatprep.subr.mxu1 %v498_v0 }
  0x3c   :  { %348 = vmatpush3.msra.mxu0 %v72_v11  ;;  %379 = vmatpush3.msra.mxu1 %v188_v32 }
  0x3d   :  { %349 = vmatprep.subr.mxu0 %v498_v0  ;;  %380 = vmatprep.subr.mxu1 %v498_v0 }
  0x3e   :  { %350 = vmatpush3.msra.mxu0 %v71_v12  ;;  %381 = vmatpush3.msra.mxu1 %v187_v33 }
  0x3f   :  { %351 = vmatprep.subr.mxu0 %v498_v0  ;;  %382 = vmatprep.subr.mxu1 %v498_v0 }
  0x40   :  { %352 = vmatpush3.msra.mxu0 %v70_v13  ;;  %383 = vmatpush3.msra.mxu1 %v186_v34 }
  0x41   :  { %353 = vmatprep.subr.mxu0 %v498_v0  ;;  %384 = vmatprep.subr.mxu1 %v498_v0 }
  0x42   :  { %354 = vmatpush3.msra.mxu0 %v69_v14  ;;  %385 = vmatpush3.msra.mxu1 %v185_v35 }
  0x43   :  { %355 = vmatprep.subr.mxu0 %v498_v0  ;;  %386 = vmatprep.subr.mxu1 %v498_v0 }
  0x44   :  { %356 = vmatpush3.msra.mxu0 %v68_v15  ;;  %387 = vmatpush3.msra.mxu1 %v184_v36 }
  0x45   :  { %357 = vmatprep.subr.mxu0 %v498_v0  ;;  %388 = vmatprep.subr.mxu1 %v498_v0 }
  0x46   :  { %358 = vmatpush3.msra.mxu0 %v67_v16  ;;  %389 = vmatpush3.msra.mxu1 %v183_v37 }
  0x47   :  { %360 = vmatmul.mubr.f32.vlgmr.msra.gmra.mxu0 %v66_v17  ;;  %390 = vmatprep.subr.mxu1 %v498_v0 }
  0x48   :  { %391 = vmatpush3.msra.mxu1 %v182_v38 }
  0x49   :  { %392 = vmatprep.subr.mxu1 %v498_v0 }
  0x4a   :  { %393 = vmatpush3.msra.mxu1 %v181_v39 }
 0x107   :  { %v149_v22 = vpop.f32.mrf.mxu0 }
 0x108   :  { %v166_v23 = vadd.f32 %v291_v21, %v149_v22 }
 0x109   :  { %v361_v24 = vpop.f32.mrf.mxu0 }
 0x10a   :  { %v167_v25 = vmax.f32 %v166_v23, 0.0 }
 0x10c   :  { %168 = vadd.xlane.f32.xlu0 %v167_v25  ;;  %v170_v26 = vmul.f32 %v167_v25, %v167_v25 }
 0x110   :  { %171 = vadd.xlane.f32.xlu0 %v170_v26 }
 0x195   :  { %v169_v40 = vpop.xlane.xlu0 %168 }
 0x196   :  { %v173_v41 = vmul.f32 0.03125, %v169_v40 }
 0x198   :  { %v175_v43 = vmul.f32 %v173_v41, %v173_v41  ;;  %v177_v47 = vsub.f32 %v167_v25, %v173_v41 }
 0x199   :  { %v172_v42 = vpop.xlane.xlu0 %171 }
 0x19a   :  { %v174_v44 = vmul.f32 0.03125, %v172_v42 }
 0x19c   :  { %v176_v45 = vsub.f32 %v174_v44, %v175_v43 }
 0x19e   :  { %v178_v46 = vadd.f32 1e-05, %v176_v45 }
 0x1a0   :  { %405 = vrsqrt.f32 %v178_v46 }
 0x1ad   :  { %v406_v48 = vpop.eup %405 }
 0x1ae   :  { %v180_v49 = vmul.f32 %v406_v48, %v177_v47 }
 0x1b0   :  { %395 = vmatmul.mubr.f32.vlgmr.msra.gmra.mxu1 %v180_v49 }
 0x270   :  { %v270_v51 = vpop.f32.mrf.mxu1 }
 0x271   :  { %v271_v52 = vadd.f32 %v292_v50, %v270_v51 }
 0x272   :  { %v396_v53 = vpop.f32.mrf.mxu1 }
 0x273   :  { %274 = vst [vmem:[#allocation9] sm:$0xff] %v271_v52 }
 0x274   :  { %478 = shalt.err (!%p475_p5)
}
 0x275   :  { %284 = dma.vmem_to_hbm [thread:$0]  %s282_s11, 128, %s588_s5, [#allocation5]  }
 0x276   :  { %491 = dma.done.wait [#allocation5], 128  }
 0x277   :  { %492 = vsyncadd [#allocation5], 4294967168 }
 0x278   :  { %288 = vsyncpa [#allocation4], 1 }
 0x279   :  { %289 = vsyncpa [#allocation7], 1 }
 0x27a   :  { %290 = vsyncpa [#allocation5], 1 }

</bundles_post_ra>
